<compile_context>
chip_gen: v7x
topology: tpu7x:2x2x1
jax: 0.10.0
libtpu: 0.0.40
codegen_flags: <defaults>
</compile_context>

<pallas_src>
import math

import jax
import jax.numpy as jnp
from jax import lax
from jax.experimental import pallas as pl
from jax.experimental.pallas import tpu as pltpu


# Per-step output block ceiling (single buffer). Double-buffered this stays
# well under the 32 MiB scoped-VMEM default on v5e/v6e/v7x.
_MAX_BLOCK_BYTES = 12 << 20
# Vreg budget for the in-kernel replicated "super tile" (<= 16 vregs of f32).
_FILL_TILE_BYTES = 64 << 10


def _fill_kernel(c_ref, o_ref):
    """Write o_ref (B*R, C) as B stacked copies of the constant tile c_ref (R, C)."""
    r, cdim = c_ref.shape
    rows = o_ref.shape[0]
    b = rows // r
    c = c_ref[...].astype(o_ref.dtype)

    if b == 1:
        o_ref[...] = c
        return

    # Replicate the constant into a modest super tile, then store it repeatedly.
    # Keeps vreg pressure bounded for multi-MiB blocks while amortizing the
    # store count for tiny constants.  All shapes are static at trace time.
    budget = max(1, _FILL_TILE_BYTES // max(1, r * cdim * 4))
    copies_per_tile = 1
    for d in range(min(b, budget), 0, -1):
        if b % d == 0:
            copies_per_tile = d
            break
    tile = c if copies_per_tile == 1 else jnp.tile(c, (copies_per_tile, 1))
    tile_rows = copies_per_tile * r
    n_tiles = b // copies_per_tile

    if n_tiles == 1:
        o_ref[...] = tile
        return

    def body(i, carry):
        start = pl.multiple_of(i * tile_rows, tile_rows)
        o_ref[pl.ds(start, tile_rows), :] = tile
        return carry

    lax.fori_loop(0, n_tiles, body, 0, unroll=(n_tiles <= 16))


def _choose_copies_per_block(n, rows_per_copy, copy_bytes, target_block_bytes):
    """Copies-per-grid-step B.

    Ensures B*rows_per_copy % 8 == 0 (sublane-dense blocks) or B == n (full
    array), targets ~target_block_bytes per block, prefers an exact divisor of
    n (no ragged masked last block), and nudges toward an even step count so
    v7x's two TensorCores get balanced work (harmless on 1-TC chips).
    """
    g = 8 // math.gcd(rows_per_copy, 8)  # smallest B with B*R % 8 == 0
    b = max(1, target_block_bytes // copy_bytes)
    b = max(g, (b // g) * g)
    if b >= n:
        return n  # single full-array block (always layout-legal)

    # Prefer an exact divisor of n close to the target (full last writeback).
    cand = b
    while cand >= g:
        if n % cand == 0:
            b = cand
            break
        cand -= g

    # Even step count for v7x megacore sharding of the "parallel" axis.
    steps = pl.cdiv(n, b)
    if steps >= 3 and steps % 2 == 1:
        b_even = ((pl.cdiv(n, steps + 1) + g - 1) // g) * g
        if b_even >= g and pl.cdiv(n, b_even) % 2 == 0:
            b = b_even
    return b


def trainable_constant_forward(x, constant, *, target_block_bytes=4 << 20,
                               min_pallas_bytes=512 << 10):
    """Pallas equivalent of TrainableConstantModule.forward.

    Args:
      x: array whose shape[:-1] gives the leading "copy" dims (values unused).
      constant: the trainable constant (any rank, any float dtype).
      target_block_bytes: per-grid-step output block size target.
      min_pallas_bytes: outputs smaller than this use XLA's broadcast directly.

    Returns:
      float32 array of shape (*x.shape[:-1], *constant.shape).
    """
    constant = jnp.asarray(constant, dtype=jnp.float32)
    const_shape = tuple(constant.shape)
    copies = tuple(x.shape[:-1])
    out_shape = copies + const_shape

    if len(copies) == 0:           # nothing to replicate
        return constant

    n = math.prod(copies)          # total number of copies to write
    l = math.prod(const_shape) if const_shape else 1
    if n == 0 or l == 0:
        return jnp.zeros(out_shape, dtype=jnp.float32)

    copy_bytes = l * 4
    out_bytes = n * copy_bytes

    # Lane-dense 2-D view of one constant copy: (R, C) with C % 128 == 0.
    last = const_shape[-1] if const_shape else 1
    if last % 128 == 0:
        c_lanes = last
    elif l % 128 == 0:
        c_lanes = 128
    else:
        c_lanes = 0                # no lane-dense reshape exists

    # Fallback to XLA's broadcast when:
    #  * the output is tiny (kernel launch + pipeline prologue dominates),
    #  * the constant can't be viewed lane-dense (would force masked vst.msk),
    #  * sublane-dense blocking of a huge odd-row constant would blow VMEM.
    # TODO(synk): a lane-dense supertile (repeat the constant along rows)
    # could keep the non-128-divisible case on the Pallas path.
    use_fallback = (out_bytes < min_pallas_bytes) or (c_lanes == 0)
    if not use_fallback:
        r_rows = l // c_lanes
        g = 8 // math.gcd(r_rows, 8)
        if min(n, g) * copy_bytes > _MAX_BLOCK_BYTES:
            use_fallback = True
    if use_fallback:
        return jnp.broadcast_to(constant, out_shape)

    c2 = constant.reshape(r_rows, c_lanes)
    b = _choose_copies_per_block(n, r_rows, copy_bytes, target_block_bytes)
    block_rows = b * r_rows
    total_rows = n * r_rows
    grid = (pl.cdiv(n, b),)

    cost = pl.CostEstimate(
        flops=0,
        transcendentals=0,
        bytes_accessed=out_bytes + copy_bytes,
    )

    flat = pl.pallas_call(
        _fill_kernel,
        out_shape=jax.ShapeDtypeStruct((total_rows, c_lanes), jnp.float32),
        grid=grid,
        in_specs=[
            # Constant block index never changes -> fetched once, kept in VMEM.
            pl.BlockSpec((r_rows, c_lanes), lambda i: (0, 0)),
        ],
        out_specs=pl.BlockSpec((block_rows, c_lanes), lambda i: (i, 0)),
        compiler_params=pltpu.CompilerParams(
            dimension_semantics=("parallel",),
        ),
        cost_estimate=cost,
    )(c2)

    return flat.reshape(out_shape)


if __name__ == "__main__":
    key = jax.random.PRNGKey(0)
    kx, kc = jax.random.split(key)

    # Leading dims of x (2, 4, 32) are the copy dims; its last dim (16) is ignored.
    x = jax.random.normal(kx, (2, 4, 32, 16), dtype=jnp.float32)

    # nn.Parameter(torch.zeros(shape)) -> shape (8, 128). PyTorch init is zeros;
    # deterministic non-zero values make the broadcast verifiable.
    const_shape = (8, 128)
    constant = jax.random.normal(kc, const_shape, dtype=jnp.float32)

    out = jax.block_until_ready(trainable_constant_forward(x, constant))
    ref = jnp.broadcast_to(constant, x.shape[:-1] + const_shape)
    assert out.shape == x.shape[:-1] + const_shape, out.shape
    assert out.dtype == jnp.float32
    assert bool(jnp.array_equal(out, ref))

    # Regression: ragged last block + rank-1 constant (R=1), kernel path forced.
    c1 = jax.random.normal(kc, (256,), dtype=jnp.float32)
    x1 = jnp.zeros((3, 7, 5), dtype=jnp.float32)
    o1 = jax.block_until_ready(
        trainable_constant_forward(x1, c1, target_block_bytes=8 << 10,
                                   min_pallas_bytes=0))
    assert bool(jnp.array_equal(o1, jnp.broadcast_to(c1, (3, 7, 256))))

    # Regression: last dim not a multiple of 128 but total size is (lane repack).
    c2 = jax.random.normal(kc, (8, 48), dtype=jnp.float32)
    x2 = jnp.zeros((5, 9), dtype=jnp.float32)
    o2 = jax.block_until_ready(
        trainable_constant_forward(x2, c2, min_pallas_bytes=0))
    assert bool(jnp.array_equal(o2, jnp.broadcast_to(c2, (5, 8, 48))))

    # Fallback paths: scalar constant and a constant that can't be lane-packed.
    o3 = jax.block_until_ready(
        trainable_constant_forward(jnp.zeros((4, 3)), jnp.float32(2.5)))
    assert o3.shape == (4,) and bool(jnp.all(o3 == 2.5))
    c4 = jax.random.normal(kc, (7, 5), dtype=jnp.float32)
    o4 = jax.block_until_ready(
        trainable_constant_forward(jnp.zeros((2, 3, 6)), c4))
    assert bool(jnp.array_equal(o4, jnp.broadcast_to(c4, (2, 3, 7, 5))))

    print("KERNEL_OK")
</pallas_src>

<mosaic_0001>
module attributes {stable_mosaic.version = 11 : i64} {
  func.func @_fill_kernel(%arg0: i32, %arg1: memref<8x128xf32, #tpu.memory_space<vmem>>, %arg2: memref<2048x128xf32, #tpu.memory_space<vmem>>) attributes {dimension_semantics = [#tpu.dimension_semantics<parallel>], iteration_bounds = array<i64: 1>, scalar_prefetch = 0 : i64, scratch_operands = 0 : i64, tpu.core_type = #tpu.core_type<tc>, window_params = [{pipeline_mode = #tpu.pipeline_mode<synchronous>, transform_indices = @transform_0, window_bounds = array<i64: 8, 128>}, {transform_indices = @transform_1, window_bounds = array<i64: 2048, 128>}]} {
    %c0 = arith.constant 0 : index
    %c0_0 = arith.constant 0 : index
    %0 = vector.load %arg1[%c0, %c0_0] : memref<8x128xf32, #tpu.memory_space<vmem>>, vector<8x128xf32>
    %1 = tpu.concatenate %0, %0, %0, %0, %0, %0, %0, %0, %0, %0, %0, %0, %0, %0, %0, %0 in 0 : vector<8x128xf32>, vector<8x128xf32>, vector<8x128xf32>, vector<8x128xf32>, vector<8x128xf32>, vector<8x128xf32>, vector<8x128xf32>, vector<8x128xf32>, vector<8x128xf32>, vector<8x128xf32>, vector<8x128xf32>, vector<8x128xf32>, vector<8x128xf32>, vector<8x128xf32>, vector<8x128xf32>, vector<8x128xf32> -> vector<128x128xf32>
    %c0_i32 = arith.constant 0 : i32
    %c128_i32 = arith.constant 128 : i32
    %2 = arith.muli %c0_i32, %c128_i32 : i32
    %3 = tpu.assume_multiple %2, 128 : i32
    %4 = arith.index_cast %3 : i32 to index
    %c0_1 = arith.constant 0 : index
    %5 = vector.load %arg2[%4, %c0_1] : memref<2048x128xf32, #tpu.memory_space<vmem>>, vector<128x128xf32>
    tpu.vector_store %arg2[%4, %c0_1], %1 {strides = array<i32>} : memref<2048x128xf32, #tpu.memory_space<vmem>>, vector<128x128xf32>,
    %c1_i32 = arith.constant 1 : i32
    %c128_i32_2 = arith.constant 128 : i32
    %6 = arith.muli %c1_i32, %c128_i32_2 : i32
    %7 = tpu.assume_multiple %6, 128 : i32
    %8 = arith.index_cast %7 : i32 to index
    %c0_3 = arith.constant 0 : index
    %9 = vector.load %arg2[%8, %c0_3] : memref<2048x128xf32, #tpu.memory_space<vmem>>, vector<128x128xf32>
    tpu.vector_store %arg2[%8, %c0_3], %1 {strides = array<i32>} : memref<2048x128xf32, #tpu.memory_space<vmem>>, vector<128x128xf32>,
    %c2_i32 = arith.constant 2 : i32
    %c128_i32_4 = arith.constant 128 : i32
    %10 = arith.muli %c2_i32, %c128_i32_4 : i32
    %11 = tpu.assume_multiple %10, 128 : i32
    %12 = arith.index_cast %11 : i32 to index
    %c0_5 = arith.constant 0 : index
    %13 = vector.load %arg2[%12, %c0_5] : memref<2048x128xf32, #tpu.memory_space<vmem>>, vector<128x128xf32>
    tpu.vector_store %arg2[%12, %c0_5], %1 {strides = array<i32>} : memref<2048x128xf32, #tpu.memory_space<vmem>>, vector<128x128xf32>,
    %c3_i32 = arith.constant 3 : i32
    %c128_i32_6 = arith.constant 128 : i32
    %14 = arith.muli %c3_i32, %c128_i32_6 : i32
    %15 = tpu.assume_multiple %14, 128 : i32
    %16 = arith.index_cast %15 : i32 to index
    %c0_7 = arith.constant 0 : index
    %17 = vector.load %arg2[%16, %c0_7] : memref<2048x128xf32, #tpu.memory_space<vmem>>, vector<128x128xf32>
    tpu.vector_store %arg2[%16, %c0_7], %1 {strides = array<i32>} : memref<2048x128xf32, #tpu.memory_space<vmem>>, vector<128x128xf32>,
    %c4_i32 = arith.constant 4 : i32
    %c128_i32_8 = arith.constant 128 : i32
    %18 = arith.muli %c4_i32, %c128_i32_8 : i32
    %19 = tpu.assume_multiple %18, 128 : i32
    %20 = arith.index_cast %19 : i32 to index
    %c0_9 = arith.constant 0 : index
    %21 = vector.load %arg2[%20, %c0_9] : memref<2048x128xf32, #tpu.memory_space<vmem>>, vector<128x128xf32>
    tpu.vector_store %arg2[%20, %c0_9], %1 {strides = array<i32>} : memref<2048x128xf32, #tpu.memory_space<vmem>>, vector<128x128xf32>,
    %c5_i32 = arith.constant 5 : i32
    %c128_i32_10 = arith.constant 128 : i32
    %22 = arith.muli %c5_i32, %c128_i32_10 : i32
    %23 = tpu.assume_multiple %22, 128 : i32
    %24 = arith.index_cast %23 : i32 to index
    %c0_11 = arith.constant 0 : index
    %25 = vector.load %arg2[%24, %c0_11] : memref<2048x128xf32, #tpu.memory_space<vmem>>, vector<128x128xf32>
    tpu.vector_store %arg2[%24, %c0_11], %1 {strides = array<i32>} : memref<2048x128xf32, #tpu.memory_space<vmem>>, vector<128x128xf32>,
    %c6_i32 = arith.constant 6 : i32
    %c128_i32_12 = arith.constant 128 : i32
    %26 = arith.muli %c6_i32, %c128_i32_12 : i32
    %27 = tpu.assume_multiple %26, 128 : i32
    %28 = arith.index_cast %27 : i32 to index
    %c0_13 = arith.constant 0 : index
    %29 = vector.load %arg2[%28, %c0_13] : memref<2048x128xf32, #tpu.memory_space<vmem>>, vector<128x128xf32>
    tpu.vector_store %arg2[%28, %c0_13], %1 {strides = array<i32>} : memref<2048x128xf32, #tpu.memory_space<vmem>>, vector<128x128xf32>,
    %c7_i32 = arith.constant 7 : i32
    %c128_i32_14 = arith.constant 128 : i32
    %30 = arith.muli %c7_i32, %c128_i32_14 : i32
    %31 = tpu.assume_multiple %30, 128 : i32
    %32 = arith.index_cast %31 : i32 to index
    %c0_15 = arith.constant 0 : index
    %33 = vector.load %arg2[%32, %c0_15] : memref<2048x128xf32, #tpu.memory_space<vmem>>, vector<128x128xf32>
    tpu.vector_store %arg2[%32, %c0_15], %1 {strides = array<i32>} : memref<2048x128xf32, #tpu.memory_space<vmem>>, vector<128x128xf32>,
    %c8_i32 = arith.constant 8 : i32
    %c128_i32_16 = arith.constant 128 : i32
    %34 = arith.muli %c8_i32, %c128_i32_16 : i32
    %35 = tpu.assume_multiple %34, 128 : i32
    %36 = arith.index_cast %35 : i32 to index
    %c0_17 = arith.constant 0 : index
    %37 = vector.load %arg2[%36, %c0_17] : memref<2048x128xf32, #tpu.memory_space<vmem>>, vector<128x128xf32>
    tpu.vector_store %arg2[%36, %c0_17], %1 {strides = array<i32>} : memref<2048x128xf32, #tpu.memory_space<vmem>>, vector<128x128xf32>,
    %c9_i32 = arith.constant 9 : i32
    %c128_i32_18 = arith.constant 128 : i32
    %38 = arith.muli %c9_i32, %c128_i32_18 : i32
    %39 = tpu.assume_multiple %38, 128 : i32
    %40 = arith.index_cast %39 : i32 to index
    %c0_19 = arith.constant 0 : index
    %41 = vector.load %arg2[%40, %c0_19] : memref<2048x128xf32, #tpu.memory_space<vmem>>, vector<128x128xf32>
    tpu.vector_store %arg2[%40, %c0_19], %1 {strides = array<i32>} : memref<2048x128xf32, #tpu.memory_space<vmem>>, vector<128x128xf32>,
    %c10_i32 = arith.constant 10 : i32
    %c128_i32_20 = arith.constant 128 : i32
    %42 = arith.muli %c10_i32, %c128_i32_20 : i32
    %43 = tpu.assume_multiple %42, 128 : i32
    %44 = arith.index_cast %43 : i32 to index
    %c0_21 = arith.constant 0 : index
    %45 = vector.load %arg2[%44, %c0_21] : memref<2048x128xf32, #tpu.memory_space<vmem>>, vector<128x128xf32>
    tpu.vector_store %arg2[%44, %c0_21], %1 {strides = array<i32>} : memref<2048x128xf32, #tpu.memory_space<vmem>>, vector<128x128xf32>,
    %c11_i32 = arith.constant 11 : i32
    %c128_i32_22 = arith.constant 128 : i32
    %46 = arith.muli %c11_i32, %c128_i32_22 : i32
    %47 = tpu.assume_multiple %46, 128 : i32
    %48 = arith.index_cast %47 : i32 to index
    %c0_23 = arith.constant 0 : index
    %49 = vector.load %arg2[%48, %c0_23] : memref<2048x128xf32, #tpu.memory_space<vmem>>, vector<128x128xf32>
    tpu.vector_store %arg2[%48, %c0_23], %1 {strides = array<i32>} : memref<2048x128xf32, #tpu.memory_space<vmem>>, vector<128x128xf32>,
    %c12_i32 = arith.constant 12 : i32
    %c128_i32_24 = arith.constant 128 : i32
    %50 = arith.muli %c12_i32, %c128_i32_24 : i32
    %51 = tpu.assume_multiple %50, 128 : i32
    %52 = arith.index_cast %51 : i32 to index
    %c0_25 = arith.constant 0 : index
    %53 = vector.load %arg2[%52, %c0_25] : memref<2048x128xf32, #tpu.memory_space<vmem>>, vector<128x128xf32>
    tpu.vector_store %arg2[%52, %c0_25], %1 {strides = array<i32>} : memref<2048x128xf32, #tpu.memory_space<vmem>>, vector<128x128xf32>,
    %c13_i32 = arith.constant 13 : i32
    %c128_i32_26 = arith.constant 128 : i32
    %54 = arith.muli %c13_i32, %c128_i32_26 : i32
    %55 = tpu.assume_multiple %54, 128 : i32
    %56 = arith.index_cast %55 : i32 to index
    %c0_27 = arith.constant 0 : index
    %57 = vector.load %arg2[%56, %c0_27] : memref<2048x128xf32, #tpu.memory_space<vmem>>, vector<128x128xf32>
    tpu.vector_store %arg2[%56, %c0_27], %1 {strides = array<i32>} : memref<2048x128xf32, #tpu.memory_space<vmem>>, vector<128x128xf32>,
    %c14_i32 = arith.constant 14 : i32
    %c128_i32_28 = arith.constant 128 : i32
    %58 = arith.muli %c14_i32, %c128_i32_28 : i32
    %59 = tpu.assume_multiple %58, 128 : i32
    %60 = arith.index_cast %59 : i32 to index
    %c0_29 = arith.constant 0 : index
    %61 = vector.load %arg2[%60, %c0_29] : memref<2048x128xf32, #tpu.memory_space<vmem>>, vector<128x128xf32>
    tpu.vector_store %arg2[%60, %c0_29], %1 {strides = array<i32>} : memref<2048x128xf32, #tpu.memory_space<vmem>>, vector<128x128xf32>,
    %c15_i32 = arith.constant 15 : i32
    %c128_i32_30 = arith.constant 128 : i32
    %62 = arith.muli %c15_i32, %c128_i32_30 : i32
    %63 = tpu.assume_multiple %62, 128 : i32
    %64 = arith.index_cast %63 : i32 to index
    %c0_31 = arith.constant 0 : index
    %65 = vector.load %arg2[%64, %c0_31] : memref<2048x128xf32, #tpu.memory_space<vmem>>, vector<128x128xf32>
    tpu.vector_store %arg2[%64, %c0_31], %1 {strides = array<i32>} : memref<2048x128xf32, #tpu.memory_space<vmem>>, vector<128x128xf32>,
    %c16_i32 = arith.constant 16 : i32
    return
  }
  func.func @transform_0(%arg0: i32) -> (i32, i32) {
    %c0_i32 = arith.constant 0 : i32
    %c0_i32_0 = arith.constant 0 : i32
    %c0_i32_1 = arith.constant 0 : i32
    return %c0_i32, %c0_i32_0 : i32, i32
  }
  func.func @transform_1(%arg0: i32) -> (i32, i32) {
    %c0_i32 = arith.constant 0 : i32
    %c0_i32_0 = arith.constant 0 : i32
    return %arg0, %c0_i32 : i32, i32
  }
}

</mosaic_0001>

<bundles_post_ra>
// kernel: tpu_custom_call.1
= control target key start
LH: loop header
LB: loop body
LE: loop exit
PB: predicated region body
PF: predicated region fallthrough
CT: control target
= control target key end

     0   :  { %6 = vsyncpa [#allocation3], 0  ;;  %s665_s0 = inlined_call_operand.hbm [shape: f32[8,128], index: 0, kind: input, shape index: {}]   ;;  %s666_s1 = inlined_call_operand.hbm [shape: f32[2048,128], index: 1, kind: output, shape index: {}]  }
   0x1   :  { %7 = vsyncpa [#allocation4], 0  ;;  %s362_s6 = smov [#allocation2]   ;;  %s314_s10 = scalar_lea.hbm %s665_s0, 128 }
   0x2   :  { %s14_s7 = sshll.u32 %s362_s6, 4  ;;  %p315_p0 = scmp.ne.s32.totalorder %s665_s0, %s314_s10  ;;  %s15_s7 = int_to_ptr.vmem [resolvable:$true] %s14_s7 }
   0x3   :  { %p318_p1 = scmp.lt.u32.totalorder %s314_s10, %s665_s0 }
   0x5   :  { %p320_p2 = pnand %p318_p1, %p315_p0 }
   0x7   :  { %323 = shalt.err (!%p320_p2)
}
   0x8   :  { %s324_s15 = scalar_lea.vmem %s15_s7, 128  ;;  %p329_p4 = scmp.lt.s32.totalorder %s15_s7, %s15_s7 }
   0x9   :  { %p325_p3 = scmp.ne.s32.totalorder %s15_s7, %s324_s15  ;;  %p330_p5 = scmp.lt.s32.totalorder %s324_s15, %s324_s15 }
   0xb   :  { %p331_p6 = por %p330_p5, %p329_p4 }
   0xd   :  { %p332_p7 = pnand %p331_p6, %p325_p3 }
   0xf   :  { %335 = shalt.err (!%p332_p7)
}
  0x10   :  { %17 = dma.hbm_to_vmem [thread:$0]  %s665_s0, 128, %s15_s7, [#allocation3]  }
  0x11   :  { %358 = dma.done.wait [#allocation3], 128  }
  0x12   :  { %359 = vsyncadd [#allocation3], 4294967168  ;;  %s363_s18 = smov [#allocation5]   ;;  %v390_v0 = vld [vmem:[#allocation2] sm:$0xff] }
  0x13   :  { %s298_s19 = sshll.u32 %s363_s18, 4  ;;  %22 = vst [vmem:[#allocation5] sm:$0xff] %v390_v0  ;;  %23 = vst [vmem:[#allocation5 + $0x8] sm:$0xff] %v390_v0  ;;  %s388_s19 = int_to_ptr.vmem [resolvable:$true] %s298_s19 }
  0x14   :  { %24 = vst [vmem:[#allocation5 + $0x10] sm:$0xff] %v390_v0  ;;  %25 = vst [vmem:[#allocation5 + $0x18] sm:$0xff] %v390_v0  ;;  %s336_s0 = scalar_lea.vmem %s388_s19, 32768  ;;  %p341_p9 = scmp.lt.s32.totalorder %s388_s19, %s388_s19 }
  0x15   :  { %26 = vst [vmem:[#allocation5 + $0x20] sm:$0xff] %v390_v0  ;;  %27 = vst [vmem:[#allocation5 + $0x28] sm:$0xff] %v390_v0  ;;  %p337_p8 = scmp.ne.s32.totalorder %s388_s19, %s336_s0  ;;  %p342_p10 = scmp.lt.s32.totalorder %s336_s0, %s336_s0 }
  0x16   :  { %28 = vst [vmem:[#allocation5 + $0x30] sm:$0xff] %v390_v0  ;;  %29 = vst [vmem:[#allocation5 + $0x38] sm:$0xff] %v390_v0 }
  0x17   :  { %30 = vst [vmem:[#allocation5 + $0x40] sm:$0xff] %v390_v0  ;;  %31 = vst [vmem:[#allocation5 + $0x48] sm:$0xff] %v390_v0  ;;  %p343_p11 = por %p342_p10, %p341_p9 }
  0x18   :  { %32 = vst [vmem:[#allocation5 + $0x50] sm:$0xff] %v390_v0  ;;  %33 = vst [vmem:[#allocation5 + $0x58] sm:$0xff] %v390_v0 }
  0x19   :  { %34 = vst [vmem:[#allocation5 + $0x60] sm:$0xff] %v390_v0  ;;  %35 = vst [vmem:[#allocation5 + $0x68] sm:$0xff] %v390_v0  ;;  %p344_p12 = pnand %p343_p11, %p337_p8 }
  0x1a   :  { %36 = vst [vmem:[#allocation5 + $0x70] sm:$0xff] %v390_v0  ;;  %37 = vst [vmem:[#allocation5 + $0x78] sm:$0xff] %v390_v0 }
  0x1b   :  { %39 = vst [vmem:[#allocation5 + $0x80] sm:$0xff] %v390_v0  ;;  %40 = vst [vmem:[#allocation5 + $0x88] sm:$0xff] %v390_v0 }
  0x1c   :  { %41 = vst [vmem:[#allocation5 + $0x90] sm:$0xff] %v390_v0  ;;  %42 = vst [vmem:[#allocation5 + $0x98] sm:$0xff] %v390_v0 }
  0x1d   :  { %43 = vst [vmem:[#allocation5 + $0xa0] sm:$0xff] %v390_v0  ;;  %44 = vst [vmem:[#allocation5 + $0xa8] sm:$0xff] %v390_v0 }
  0x1e   :  { %45 = vst [vmem:[#allocation5 + $0xb0] sm:$0xff] %v390_v0  ;;  %46 = vst [vmem:[#allocation5 + $0xb8] sm:$0xff] %v390_v0 }
  0x1f   :  { %47 = vst [vmem:[#allocation5 + $0xc0] sm:$0xff] %v390_v0  ;;  %48 = vst [vmem:[#allocation5 + $0xc8] sm:$0xff] %v390_v0 }
  0x20   :  { %49 = vst [vmem:[#allocation5 + $0xd0] sm:$0xff] %v390_v0  ;;  %50 = vst [vmem:[#allocation5 + $0xd8] sm:$0xff] %v390_v0 }
  0x21   :  { %51 = vst [vmem:[#allocation5 + $0xe0] sm:$0xff] %v390_v0  ;;  %52 = vst [vmem:[#allocation5 + $0xe8] sm:$0xff] %v390_v0 }
  0x22   :  { %53 = vst [vmem:[#allocation5 + $0xf0] sm:$0xff] %v390_v0  ;;  %54 = vst [vmem:[#allocation5 + $0xf8] sm:$0xff] %v390_v0 }
  0x23   :  { %56 = vst [vmem:[#allocation5 + $0x100] sm:$0xff] %v390_v0  ;;  %57 = vst [vmem:[#allocation5 + $0x108] sm:$0xff] %v390_v0 }
  0x24   :  { %58 = vst [vmem:[#allocation5 + $0x110] sm:$0xff] %v390_v0  ;;  %59 = vst [vmem:[#allocation5 + $0x118] sm:$0xff] %v390_v0 }
  0x25   :  { %60 = vst [vmem:[#allocation5 + $0x120] sm:$0xff] %v390_v0  ;;  %61 = vst [vmem:[#allocation5 + $0x128] sm:$0xff] %v390_v0 }
  0x26   :  { %62 = vst [vmem:[#allocation5 + $0x130] sm:$0xff] %v390_v0  ;;  %63 = vst [vmem:[#allocation5 + $0x138] sm:$0xff] %v390_v0 }
  0x27   :  { %64 = vst [vmem:[#allocation5 + $0x140] sm:$0xff] %v390_v0  ;;  %65 = vst [vmem:[#allocation5 + $0x148] sm:$0xff] %v390_v0 }
  0x28   :  { %66 = vst [vmem:[#allocation5 + $0x150] sm:$0xff] %v390_v0  ;;  %67 = vst [vmem:[#allocation5 + $0x158] sm:$0xff] %v390_v0 }
  0x29   :  { %68 = vst [vmem:[#allocation5 + $0x160] sm:$0xff] %v390_v0  ;;  %69 = vst [vmem:[#allocation5 + $0x168] sm:$0xff] %v390_v0 }
  0x2a   :  { %70 = vst [vmem:[#allocation5 + $0x170] sm:$0xff] %v390_v0  ;;  %71 = vst [vmem:[#allocation5 + $0x178] sm:$0xff] %v390_v0 }
  0x2b   :  { %73 = vst [vmem:[#allocation5 + $0x180] sm:$0xff] %v390_v0  ;;  %74 = vst [vmem:[#allocation5 + $0x188] sm:$0xff] %v390_v0 }
  0x2c   :  { %75 = vst [vmem:[#allocation5 + $0x190] sm:$0xff] %v390_v0  ;;  %76 = vst [vmem:[#allocation5 + $0x198] sm:$0xff] %v390_v0 }
  0x2d   :  { %77 = vst [vmem:[#allocation5 + $0x1a0] sm:$0xff] %v390_v0  ;;  %78 = vst [vmem:[#allocation5 + $0x1a8] sm:$0xff] %v390_v0 }
  0x2e   :  { %79 = vst [vmem:[#allocation5 + $0x1b0] sm:$0xff] %v390_v0  ;;  %80 = vst [vmem:[#allocation5 + $0x1b8] sm:$0xff] %v390_v0 }
  0x2f   :  { %81 = vst [vmem:[#allocation5 + $0x1c0] sm:$0xff] %v390_v0  ;;  %82 = vst [vmem:[#allocation5 + $0x1c8] sm:$0xff] %v390_v0 }
  0x30   :  { %83 = vst [vmem:[#allocation5 + $0x1d0] sm:$0xff] %v390_v0  ;;  %84 = vst [vmem:[#allocation5 + $0x1d8] sm:$0xff] %v390_v0 }
  0x31   :  { %85 = vst [vmem:[#allocation5 + $0x1e0] sm:$0xff] %v390_v0  ;;  %86 = vst [vmem:[#allocation5 + $0x1e8] sm:$0xff] %v390_v0 }
  0x32   :  { %87 = vst [vmem:[#allocation5 + $0x1f0] sm:$0xff] %v390_v0  ;;  %88 = vst [vmem:[#allocation5 + $0x1f8] sm:$0xff] %v390_v0 }
  0x33   :  { %90 = vst [vmem:[#allocation5 + $0x200] sm:$0xff] %v390_v0  ;;  %91 = vst [vmem:[#allocation5 + $0x208] sm:$0xff] %v390_v0 }
  0x34   :  { %92 = vst [vmem:[#allocation5 + $0x210] sm:$0xff] %v390_v0  ;;  %93 = vst [vmem:[#allocation5 + $0x218] sm:$0xff] %v390_v0 }
  0x35   :  { %94 = vst [vmem:[#allocation5 + $0x220] sm:$0xff] %v390_v0  ;;  %95 = vst [vmem:[#allocation5 + $0x228] sm:$0xff] %v390_v0 }
  0x36   :  { %96 = vst [vmem:[#allocation5 + $0x230] sm:$0xff] %v390_v0  ;;  %97 = vst [vmem:[#allocation5 + $0x238] sm:$0xff] %v390_v0 }
  0x37   :  { %98 = vst [vmem:[#allocation5 + $0x240] sm:$0xff] %v390_v0  ;;  %99 = vst [vmem:[#allocation5 + $0x248] sm:$0xff] %v390_v0 }
  0x38   :  { %100 = vst [vmem:[#allocation5 + $0x250] sm:$0xff] %v390_v0  ;;  %101 = vst [vmem:[#allocation5 + $0x258] sm:$0xff] %v390_v0 }
  0x39   :  { %102 = vst [vmem:[#allocation5 + $0x260] sm:$0xff] %v390_v0  ;;  %103 = vst [vmem:[#allocation5 + $0x268] sm:$0xff] %v390_v0 }
  0x3a   :  { %104 = vst [vmem:[#allocation5 + $0x270] sm:$0xff] %v390_v0  ;;  %105 = vst [vmem:[#allocation5 + $0x278] sm:$0xff] %v390_v0 }
  0x3b   :  { %107 = vst [vmem:[#allocation5 + $0x280] sm:$0xff] %v390_v0  ;;  %108 = vst [vmem:[#allocation5 + $0x288] sm:$0xff] %v390_v0 }
  0x3c   :  { %109 = vst [vmem:[#allocation5 + $0x290] sm:$0xff] %v390_v0  ;;  %110 = vst [vmem:[#allocation5 + $0x298] sm:$0xff] %v390_v0 }
  0x3d   :  { %111 = vst [vmem:[#allocation5 + $0x2a0] sm:$0xff] %v390_v0  ;;  %112 = vst [vmem:[#allocation5 + $0x2a8] sm:$0xff] %v390_v0 }
  0x3e   :  { %113 = vst [vmem:[#allocation5 + $0x2b0] sm:$0xff] %v390_v0  ;;  %114 = vst [vmem:[#allocation5 + $0x2b8] sm:$0xff] %v390_v0 }
  0x3f   :  { %115 = vst [vmem:[#allocation5 + $0x2c0] sm:$0xff] %v390_v0  ;;  %116 = vst [vmem:[#allocation5 + $0x2c8] sm:$0xff] %v390_v0 }
  0x40   :  { %117 = vst [vmem:[#allocation5 + $0x2d0] sm:$0xff] %v390_v0  ;;  %118 = vst [vmem:[#allocation5 + $0x2d8] sm:$0xff] %v390_v0 }
  0x41   :  { %119 = vst [vmem:[#allocation5 + $0x2e0] sm:$0xff] %v390_v0  ;;  %120 = vst [vmem:[#allocation5 + $0x2e8] sm:$0xff] %v390_v0 }
  0x42   :  { %121 = vst [vmem:[#allocation5 + $0x2f0] sm:$0xff] %v390_v0  ;;  %122 = vst [vmem:[#allocation5 + $0x2f8] sm:$0xff] %v390_v0 }
  0x43   :  { %124 = vst [vmem:[#allocation5 + $0x300] sm:$0xff] %v390_v0  ;;  %125 = vst [vmem:[#allocation5 + $0x308] sm:$0xff] %v390_v0 }
  0x44   :  { %126 = vst [vmem:[#allocation5 + $0x310] sm:$0xff] %v390_v0  ;;  %127 = vst [vmem:[#allocation5 + $0x318] sm:$0xff] %v390_v0 }
  0x45   :  { %128 = vst [vmem:[#allocation5 + $0x320] sm:$0xff] %v390_v0  ;;  %129 = vst [vmem:[#allocation5 + $0x328] sm:$0xff] %v390_v0 }
  0x46   :  { %130 = vst [vmem:[#allocation5 + $0x330] sm:$0xff] %v390_v0  ;;  %131 = vst [vmem:[#allocation5 + $0x338] sm:$0xff] %v390_v0 }
  0x47   :  { %132 = vst [vmem:[#allocation5 + $0x340] sm:$0xff] %v390_v0  ;;  %133 = vst [vmem:[#allocation5 + $0x348] sm:$0xff] %v390_v0 }
  0x48   :  { %134 = vst [vmem:[#allocation5 + $0x350] sm:$0xff] %v390_v0  ;;  %135 = vst [vmem:[#allocation5 + $0x358] sm:$0xff] %v390_v0 }
  0x49   :  { %136 = vst [vmem:[#allocation5 + $0x360] sm:$0xff] %v390_v0  ;;  %137 = vst [vmem:[#allocation5 + $0x368] sm:$0xff] %v390_v0 }
  0x4a   :  { %138 = vst [vmem:[#allocation5 + $0x370] sm:$0xff] %v390_v0  ;;  %139 = vst [vmem:[#allocation5 + $0x378] sm:$0xff] %v390_v0 }
  0x4b   :  { %141 = vst [vmem:[#allocation5 + $0x380] sm:$0xff] %v390_v0  ;;  %142 = vst [vmem:[#allocation5 + $0x388] sm:$0xff] %v390_v0 }
  0x4c   :  { %143 = vst [vmem:[#allocation5 + $0x390] sm:$0xff] %v390_v0  ;;  %144 = vst [vmem:[#allocation5 + $0x398] sm:$0xff] %v390_v0 }
  0x4d   :  { %145 = vst [vmem:[#allocation5 + $0x3a0] sm:$0xff] %v390_v0  ;;  %146 = vst [vmem:[#allocation5 + $0x3a8] sm:$0xff] %v390_v0 }
  0x4e   :  { %147 = vst [vmem:[#allocation5 + $0x3b0] sm:$0xff] %v390_v0  ;;  %148 = vst [vmem:[#allocation5 + $0x3b8] sm:$0xff] %v390_v0 }
  0x4f   :  { %149 = vst [vmem:[#allocation5 + $0x3c0] sm:$0xff] %v390_v0  ;;  %150 = vst [vmem:[#allocation5 + $0x3c8] sm:$0xff] %v390_v0 }
  0x50   :  { %151 = vst [vmem:[#allocation5 + $0x3d0] sm:$0xff] %v390_v0  ;;  %152 = vst [vmem:[#allocation5 + $0x3d8] sm:$0xff] %v390_v0 }
  0x51   :  { %153 = vst [vmem:[#allocation5 + $0x3e0] sm:$0xff] %v390_v0  ;;  %154 = vst [vmem:[#allocation5 + $0x3e8] sm:$0xff] %v390_v0 }
  0x52   :  { %155 = vst [vmem:[#allocation5 + $0x3f0] sm:$0xff] %v390_v0  ;;  %156 = vst [vmem:[#allocation5 + $0x3f8] sm:$0xff] %v390_v0 }
  0x53   :  { %158 = vst [vmem:[#allocation5 + $0x400] sm:$0xff] %v390_v0  ;;  %159 = vst [vmem:[#allocation5 + $0x408] sm:$0xff] %v390_v0 }
  0x54   :  { %160 = vst [vmem:[#allocation5 + $0x410] sm:$0xff] %v390_v0  ;;  %161 = vst [vmem:[#allocation5 + $0x418] sm:$0xff] %v390_v0 }
  0x55   :  { %162 = vst [vmem:[#allocation5 + $0x420] sm:$0xff] %v390_v0  ;;  %163 = vst [vmem:[#allocation5 + $0x428] sm:$0xff] %v390_v0 }
  0x56   :  { %164 = vst [vmem:[#allocation5 + $0x430] sm:$0xff] %v390_v0  ;;  %165 = vst [vmem:[#allocation5 + $0x438] sm:$0xff] %v390_v0 }
  0x57   :  { %166 = vst [vmem:[#allocation5 + $0x440] sm:$0xff] %v390_v0  ;;  %167 = vst [vmem:[#allocation5 + $0x448] sm:$0xff] %v390_v0 }
  0x58   :  { %168 = vst [vmem:[#allocation5 + $0x450] sm:$0xff] %v390_v0  ;;  %169 = vst [vmem:[#allocation5 + $0x458] sm:$0xff] %v390_v0 }
  0x59   :  { %170 = vst [vmem:[#allocation5 + $0x460] sm:$0xff] %v390_v0  ;;  %171 = vst [vmem:[#allocation5 + $0x468] sm:$0xff] %v390_v0 }
  0x5a   :  { %172 = vst [vmem:[#allocation5 + $0x470] sm:$0xff] %v390_v0  ;;  %173 = vst [vmem:[#allocation5 + $0x478] sm:$0xff] %v390_v0 }
  0x5b   :  { %175 = vst [vmem:[#allocation5 + $0x480] sm:$0xff] %v390_v0  ;;  %176 = vst [vmem:[#allocation5 + $0x488] sm:$0xff] %v390_v0 }
  0x5c   :  { %177 = vst [vmem:[#allocation5 + $0x490] sm:$0xff] %v390_v0  ;;  %178 = vst [vmem:[#allocation5 + $0x498] sm:$0xff] %v390_v0 }
  0x5d   :  { %179 = vst [vmem:[#allocation5 + $0x4a0] sm:$0xff] %v390_v0  ;;  %180 = vst [vmem:[#allocation5 + $0x4a8] sm:$0xff] %v390_v0 }
  0x5e   :  { %181 = vst [vmem:[#allocation5 + $0x4b0] sm:$0xff] %v390_v0  ;;  %182 = vst [vmem:[#allocation5 + $0x4b8] sm:$0xff] %v390_v0 }
  0x5f   :  { %183 = vst [vmem:[#allocation5 + $0x4c0] sm:$0xff] %v390_v0  ;;  %184 = vst [vmem:[#allocation5 + $0x4c8] sm:$0xff] %v390_v0 }
  0x60   :  { %185 = vst [vmem:[#allocation5 + $0x4d0] sm:$0xff] %v390_v0  ;;  %186 = vst [vmem:[#allocation5 + $0x4d8] sm:$0xff] %v390_v0 }
  0x61   :  { %187 = vst [vmem:[#allocation5 + $0x4e0] sm:$0xff] %v390_v0  ;;  %188 = vst [vmem:[#allocation5 + $0x4e8] sm:$0xff] %v390_v0 }
  0x62   :  { %189 = vst [vmem:[#allocation5 + $0x4f0] sm:$0xff] %v390_v0  ;;  %190 = vst [vmem:[#allocation5 + $0x4f8] sm:$0xff] %v390_v0 }
  0x63   :  { %192 = vst [vmem:[#allocation5 + $0x500] sm:$0xff] %v390_v0  ;;  %193 = vst [vmem:[#allocation5 + $0x508] sm:$0xff] %v390_v0 }
  0x64   :  { %194 = vst [vmem:[#allocation5 + $0x510] sm:$0xff] %v390_v0  ;;  %195 = vst [vmem:[#allocation5 + $0x518] sm:$0xff] %v390_v0 }
  0x65   :  { %196 = vst [vmem:[#allocation5 + $0x520] sm:$0xff] %v390_v0  ;;  %197 = vst [vmem:[#allocation5 + $0x528] sm:$0xff] %v390_v0 }
  0x66   :  { %198 = vst [vmem:[#allocation5 + $0x530] sm:$0xff] %v390_v0  ;;  %199 = vst [vmem:[#allocation5 + $0x538] sm:$0xff] %v390_v0 }
  0x67   :  { %200 = vst [vmem:[#allocation5 + $0x540] sm:$0xff] %v390_v0  ;;  %201 = vst [vmem:[#allocation5 + $0x548] sm:$0xff] %v390_v0 }
  0x68   :  { %202 = vst [vmem:[#allocation5 + $0x550] sm:$0xff] %v390_v0  ;;  %203 = vst [vmem:[#allocation5 + $0x558] sm:$0xff] %v390_v0 }
  0x69   :  { %204 = vst [vmem:[#allocation5 + $0x560] sm:$0xff] %v390_v0  ;;  %205 = vst [vmem:[#allocation5 + $0x568] sm:$0xff] %v390_v0 }
  0x6a   :  { %206 = vst [vmem:[#allocation5 + $0x570] sm:$0xff] %v390_v0  ;;  %207 = vst [vmem:[#allocation5 + $0x578] sm:$0xff] %v390_v0 }
  0x6b   :  { %209 = vst [vmem:[#allocation5 + $0x580] sm:$0xff] %v390_v0  ;;  %210 = vst [vmem:[#allocation5 + $0x588] sm:$0xff] %v390_v0 }
  0x6c   :  { %211 = vst [vmem:[#allocation5 + $0x590] sm:$0xff] %v390_v0  ;;  %212 = vst [vmem:[#allocation5 + $0x598] sm:$0xff] %v390_v0 }
  0x6d   :  { %213 = vst [vmem:[#allocation5 + $0x5a0] sm:$0xff] %v390_v0  ;;  %214 = vst [vmem:[#allocation5 + $0x5a8] sm:$0xff] %v390_v0 }
  0x6e   :  { %215 = vst [vmem:[#allocation5 + $0x5b0] sm:$0xff] %v390_v0  ;;  %216 = vst [vmem:[#allocation5 + $0x5b8] sm:$0xff] %v390_v0 }
  0x6f   :  { %217 = vst [vmem:[#allocation5 + $0x5c0] sm:$0xff] %v390_v0  ;;  %218 = vst [vmem:[#allocation5 + $0x5c8] sm:$0xff] %v390_v0 }
  0x70   :  { %219 = vst [vmem:[#allocation5 + $0x5d0] sm:$0xff] %v390_v0  ;;  %220 = vst [vmem:[#allocation5 + $0x5d8] sm:$0xff] %v390_v0 }
  0x71   :  { %221 = vst [vmem:[#allocation5 + $0x5e0] sm:$0xff] %v390_v0  ;;  %222 = vst [vmem:[#allocation5 + $0x5e8] sm:$0xff] %v390_v0 }
  0x72   :  { %223 = vst [vmem:[#allocation5 + $0x5f0] sm:$0xff] %v390_v0  ;;  %224 = vst [vmem:[#allocation5 + $0x5f8] sm:$0xff] %v390_v0 }
  0x73   :  { %226 = vst [vmem:[#allocation5 + $0x600] sm:$0xff] %v390_v0  ;;  %227 = vst [vmem:[#allocation5 + $0x608] sm:$0xff] %v390_v0 }
  0x74   :  { %228 = vst [vmem:[#allocation5 + $0x610] sm:$0xff] %v390_v0  ;;  %229 = vst [vmem:[#allocation5 + $0x618] sm:$0xff] %v390_v0 }
  0x75   :  { %230 = vst [vmem:[#allocation5 + $0x620] sm:$0xff] %v390_v0  ;;  %231 = vst [vmem:[#allocation5 + $0x628] sm:$0xff] %v390_v0 }
  0x76   :  { %232 = vst [vmem:[#allocation5 + $0x630] sm:$0xff] %v390_v0  ;;  %233 = vst [vmem:[#allocation5 + $0x638] sm:$0xff] %v390_v0 }
  0x77   :  { %234 = vst [vmem:[#allocation5 + $0x640] sm:$0xff] %v390_v0  ;;  %235 = vst [vmem:[#allocation5 + $0x648] sm:$0xff] %v390_v0 }
  0x78   :  { %236 = vst [vmem:[#allocation5 + $0x650] sm:$0xff] %v390_v0  ;;  %237 = vst [vmem:[#allocation5 + $0x658] sm:$0xff] %v390_v0 }
  0x79   :  { %238 = vst [vmem:[#allocation5 + $0x660] sm:$0xff] %v390_v0  ;;  %239 = vst [vmem:[#allocation5 + $0x668] sm:$0xff] %v390_v0 }
  0x7a   :  { %240 = vst [vmem:[#allocation5 + $0x670] sm:$0xff] %v390_v0  ;;  %241 = vst [vmem:[#allocation5 + $0x678] sm:$0xff] %v390_v0 }
  0x7b   :  { %243 = vst [vmem:[#allocation5 + $0x680] sm:$0xff] %v390_v0  ;;  %244 = vst [vmem:[#allocation5 + $0x688] sm:$0xff] %v390_v0 }
  0x7c   :  { %245 = vst [vmem:[#allocation5 + $0x690] sm:$0xff] %v390_v0  ;;  %246 = vst [vmem:[#allocation5 + $0x698] sm:$0xff] %v390_v0 }
  0x7d   :  { %247 = vst [vmem:[#allocation5 + $0x6a0] sm:$0xff] %v390_v0  ;;  %248 = vst [vmem:[#allocation5 + $0x6a8] sm:$0xff] %v390_v0 }
  0x7e   :  { %249 = vst [vmem:[#allocation5 + $0x6b0] sm:$0xff] %v390_v0  ;;  %250 = vst [vmem:[#allocation5 + $0x6b8] sm:$0xff] %v390_v0 }
  0x7f   :  { %251 = vst [vmem:[#allocation5 + $0x6c0] sm:$0xff] %v390_v0  ;;  %252 = vst [vmem:[#allocation5 + $0x6c8] sm:$0xff] %v390_v0 }
  0x80   :  { %253 = vst [vmem:[#allocation5 + $0x6d0] sm:$0xff] %v390_v0  ;;  %254 = vst [vmem:[#allocation5 + $0x6d8] sm:$0xff] %v390_v0 }
  0x81   :  { %255 = vst [vmem:[#allocation5 + $0x6e0] sm:$0xff] %v390_v0  ;;  %256 = vst [vmem:[#allocation5 + $0x6e8] sm:$0xff] %v390_v0 }
  0x82   :  { %257 = vst [vmem:[#allocation5 + $0x6f0] sm:$0xff] %v390_v0  ;;  %258 = vst [vmem:[#allocation5 + $0x6f8] sm:$0xff] %v390_v0 }
  0x83   :  { %260 = vst [vmem:[#allocation5 + $0x700] sm:$0xff] %v390_v0  ;;  %261 = vst [vmem:[#allocation5 + $0x708] sm:$0xff] %v390_v0 }
  0x84   :  { %262 = vst [vmem:[#allocation5 + $0x710] sm:$0xff] %v390_v0  ;;  %263 = vst [vmem:[#allocation5 + $0x718] sm:$0xff] %v390_v0 }
  0x85   :  { %264 = vst [vmem:[#allocation5 + $0x720] sm:$0xff] %v390_v0  ;;  %265 = vst [vmem:[#allocation5 + $0x728] sm:$0xff] %v390_v0 }
  0x86   :  { %266 = vst [vmem:[#allocation5 + $0x730] sm:$0xff] %v390_v0  ;;  %267 = vst [vmem:[#allocation5 + $0x738] sm:$0xff] %v390_v0 }
  0x87   :  { %268 = vst [vmem:[#allocation5 + $0x740] sm:$0xff] %v390_v0  ;;  %269 = vst [vmem:[#allocation5 + $0x748] sm:$0xff] %v390_v0 }
  0x88   :  { %270 = vst [vmem:[#allocation5 + $0x750] sm:$0xff] %v390_v0  ;;  %271 = vst [vmem:[#allocation5 + $0x758] sm:$0xff] %v390_v0 }
  0x89   :  { %272 = vst [vmem:[#allocation5 + $0x760] sm:$0xff] %v390_v0  ;;  %273 = vst [vmem:[#allocation5 + $0x768] sm:$0xff] %v390_v0 }
  0x8a   :  { %274 = vst [vmem:[#allocation5 + $0x770] sm:$0xff] %v390_v0  ;;  %275 = vst [vmem:[#allocation5 + $0x778] sm:$0xff] %v390_v0 }
  0x8b   :  { %277 = vst [vmem:[#allocation5 + $0x780] sm:$0xff] %v390_v0  ;;  %278 = vst [vmem:[#allocation5 + $0x788] sm:$0xff] %v390_v0 }
  0x8c   :  { %279 = vst [vmem:[#allocation5 + $0x790] sm:$0xff] %v390_v0  ;;  %280 = vst [vmem:[#allocation5 + $0x798] sm:$0xff] %v390_v0 }
  0x8d   :  { %281 = vst [vmem:[#allocation5 + $0x7a0] sm:$0xff] %v390_v0  ;;  %282 = vst [vmem:[#allocation5 + $0x7a8] sm:$0xff] %v390_v0 }
  0x8e   :  { %283 = vst [vmem:[#allocation5 + $0x7b0] sm:$0xff] %v390_v0  ;;  %284 = vst [vmem:[#allocation5 + $0x7b8] sm:$0xff] %v390_v0 }
  0x8f   :  { %285 = vst [vmem:[#allocation5 + $0x7c0] sm:$0xff] %v390_v0  ;;  %286 = vst [vmem:[#allocation5 + $0x7c8] sm:$0xff] %v390_v0 }
  0x90   :  { %287 = vst [vmem:[#allocation5 + $0x7d0] sm:$0xff] %v390_v0  ;;  %288 = vst [vmem:[#allocation5 + $0x7d8] sm:$0xff] %v390_v0 }
  0x91   :  { %289 = vst [vmem:[#allocation5 + $0x7e0] sm:$0xff] %v390_v0  ;;  %290 = vst [vmem:[#allocation5 + $0x7e8] sm:$0xff] %v390_v0 }
  0x92   :  { %291 = vst [vmem:[#allocation5 + $0x7f0] sm:$0xff] %v390_v0  ;;  %292 = vst [vmem:[#allocation5 + $0x7f8] sm:$0xff] %v390_v0 }
  0x93   :  { %347 = shalt.err (!%p344_p12)
}
  0x94   :  { %s348_s22 = scalar_lea.hbm %s666_s1, 32768 }
  0x95   :  { %p349_p13 = scmp.ne.s32.totalorder %s666_s1, %s348_s22  ;;  %p352_p0 = scmp.lt.u32.totalorder %s348_s22, %s666_s1 }
  0x97   :  { %p354_p1 = pnand %p352_p0, %p349_p13 }
  0x99   :  { %357 = shalt.err (!%p354_p1)
}
  0x9a   :  { %s364_s27 = smov 128   ;;  %s365_s28 = smov 8  }
  0x9b   :  { %304 = dma.vmem_to_hbm [thread:$0]  %s388_s19, 32768, %s666_s1, [#allocation4], %s364_s27, %s364_s27, %s365_s28  }
  0x9c   :  { %360 = dma.done.wait [#allocation4], 32768  }
  0x9d   :  { %361 = vsyncadd [#allocation4], 4294934528 }
  0x9e   :  { %308 = vsyncpa [#allocation3], 1 }
  0x9f   :  { %309 = vsyncpa [#allocation4], 1 }

</bundles_post_ra>
